<compile_context>
chip_gen: v7x
topology: tpu7x:2x2x1
jax: 0.10.0
libtpu: 0.0.40
codegen_flags: <defaults>
</compile_context>

<pallas_src>
import functools
import math

import jax
import jax.numpy as jnp
from jax import lax
from jax.experimental import pallas as pl
from jax.experimental.pallas import tpu as pltpu


# ---- tunables --------------------------------------------------------------
_TARGET_INFLIGHT_DMAS = 8        # aim for ~8 concurrent copies (v6e/v7x BW)
_MIN_SUB_COPY_BYTES = 256 << 10  # don't split a chunk below this granularity
_SMALL_SEGMENT_BYTES = 512       # strided read segments below this => staged path
_VMEM_TILE_BYTES = 6 << 20       # per-tile budget for the VMEM-staged fallback
_VMEM_LIMIT_BYTES = 32 << 20     # within default scoped VMEM on v5e/v6e/v7x


def _chunk_dma_kernel(x_ref, *refs, num_out, plan):
    """Pure DMA: copy static slabs of x (HBM) into the output refs (HBM).

    `plan` is a static tuple of (out_index, src_slices, dst_slices) where the
    slice specs are ((start, size), ...) per dimension of the collapsed view.
    All copies are started before any wait so they overlap on the DMA engines.
    """
    out_refs = refs[:num_out]
    sem = refs[num_out]  # one DMA completion semaphore per planned copy
    copies = []
    for k, (oi, src, dst) in enumerate(plan):
        src_idx = tuple(pl.ds(s, c) for (s, c) in src)
        dst_idx = tuple(pl.ds(s, c) for (s, c) in dst)
        cp = pltpu.make_async_copy(
            x_ref.at[src_idx], out_refs[oi].at[dst_idx], sem.at[k]
        )
        cp.start()
        copies.append(cp)
    for cp in copies:
        cp.wait()


def _chunk_vmem_kernel(x_ref, *out_refs, col_slices):
    """VMEM-staged fallback for tiny strided segments (minor-axis chunking).

    The input tile is read once as full-width contiguous rows; each chunk slab
    is written to its own (contiguous) output block.
    """
    for o_ref, (cs, cw) in zip(out_refs, col_slices):
        o_ref[...] = x_ref[:, cs:cs + cw]


def _split_range(total, parts):
    """Split [0, total) into `parts` near-equal contiguous (start, size) ranges."""
    parts = max(1, min(parts, total))
    base, rem = divmod(total, parts)
    out, s = [], 0
    for i in range(parts):
        c = base + (1 if i < rem else 0)
        if c:
            out.append((s, c))
            s += c
    return out


def pallas_chunk(x, chunks, dim=0, *, xla_bypass_bytes=0):
    """torch.chunk(x, chunks, dim) semantics via Pallas TPU kernels.

    Chunk size = ceil(n / chunks); last chunk may be smaller; fewer chunks than
    requested may be returned for uneven splits — exactly like torch.chunk.
    """
    if chunks <= 0:
        raise ValueError("chunks must be a positive integer")
    dim = dim % x.ndim
    n = x.shape[dim]
    csize = -(-n // chunks)  # ceil
    starts, sizes = [], []
    s = 0
    while s < n:
        c = min(csize, n - s)
        starts.append(s)
        sizes.append(c)
        s += c

    out_shapes_full = [x.shape[:dim] + (c,) + x.shape[dim + 1:] for c in sizes]

    # Optional bypass: for tiny tensors pallas_call launch latency dominates and
    # XLA slices are as fast (or free via fusion). Off by default.
    if x.nbytes < xla_bypass_bytes:
        return tuple(
            lax.slice_in_dim(x, st, st + c, axis=dim)
            for st, c in zip(starts, sizes)
        )

    outer = math.prod(x.shape[:dim])
    inner = math.prod(x.shape[dim + 1:])
    itemsize = jnp.dtype(x.dtype).itemsize
    num_chunks = len(sizes)
    width = n * inner
    col_slices = tuple((st * inner, c * inner) for st, c in zip(starts, sizes))

    cost = pl.CostEstimate(flops=0, transcendentals=0,
                           bytes_accessed=2 * x.nbytes)

    # ---- VMEM-staged fallback: tiny strided read segments kill DMA efficiency.
    if (outer > 1
            and csize * inner * itemsize < _SMALL_SEGMENT_BYTES
            and width * itemsize <= (768 << 10)):
        x2 = x.reshape(outer, width)
        tile_rows = outer
        if outer * width * itemsize > _VMEM_TILE_BYTES:
            tile_rows = max(8, (_VMEM_TILE_BYTES // (width * itemsize)) // 8 * 8)
            tile_rows = min(tile_rows, outer)
        grid = (pl.cdiv(outer, tile_rows),)
        kernel = functools.partial(_chunk_vmem_kernel, col_slices=col_slices)
        outs = pl.pallas_call(
            kernel,
            out_shape=tuple(
                jax.ShapeDtypeStruct((outer, cw), x.dtype) for _, cw in col_slices
            ),
            grid=grid,
            in_specs=[pl.BlockSpec((tile_rows, width), lambda i: (i, 0))],
            out_specs=tuple(
                pl.BlockSpec((tile_rows, cw), lambda i: (i, 0))
                for _, cw in col_slices
            ),
            compiler_params=pltpu.CompilerParams(
                dimension_semantics=("parallel",),
                vmem_limit_bytes=_VMEM_LIMIT_BYTES,
            ),
            cost_estimate=cost,
        )(x2)
        return tuple(o.reshape(shp) for o, shp in zip(outs, out_shapes_full))

    # ---- Pure-DMA paths (contiguous 1-D fast path, or 2-level strided 2-D). --
    max_parts = max(1, _TARGET_INFLIGHT_DMAS // num_chunks)
    plan = []
    if outer == 1:
        # Each chunk slab is fully contiguous: flat, stride-free copies.
        xv = x.reshape(width)
        out_shapes_col = tuple(
            jax.ShapeDtypeStruct((cw,), x.dtype) for _, cw in col_slices
        )
        for oi, (cs, cw) in enumerate(col_slices):
            nbytes_i = cw * itemsize
            parts = 1
            if max_parts > 1 and nbytes_i >= 2 * _MIN_SUB_COPY_BYTES:
                parts = min(max_parts, nbytes_i // _MIN_SUB_COPY_BYTES)
            for fs, fw in _split_range(cw, parts):
                plan.append((oi, ((cs + fs, fw),), ((fs, fw),)))
    else:
        # Canonical 2-D view: `outer` rows of `c*inner` contiguous elements.
        xv = x.reshape(outer, width)
        out_shapes_col = tuple(
            jax.ShapeDtypeStruct((outer, cw), x.dtype) for _, cw in col_slices
        )
        for oi, (cs, cw) in enumerate(col_slices):
            nbytes_i = outer * cw * itemsize
            parts = 1
            if max_parts > 1 and nbytes_i >= 2 * _MIN_SUB_COPY_BYTES:
                parts = min(max_parts, nbytes_i // _MIN_SUB_COPY_BYTES, outer)
            for rs, rw in _split_range(outer, parts):
                plan.append((oi, ((rs, rw), (cs, cw)), ((rs, rw), (0, cw))))

    kernel = functools.partial(
        _chunk_dma_kernel, num_out=num_chunks, plan=tuple(plan)
    )
    outs = pl.pallas_call(
        kernel,
        out_shape=out_shapes_col,
        in_specs=[pl.BlockSpec(memory_space=pl.ANY)],
        out_specs=tuple(pl.BlockSpec(memory_space=pl.ANY) for _ in col_slices),
        scratch_shapes=[pltpu.SemaphoreType.DMA((len(plan),))],
        compiler_params=pltpu.CompilerParams(has_side_effects=True),
        cost_estimate=cost,
    )(xv)
    return tuple(o.reshape(shp) for o, shp in zip(outs, out_shapes_full))


def _check_against_ref(x, outs, dim):
    ok = True
    s = 0
    for o in outs:
        c = o.shape[dim]
        ref = lax.slice_in_dim(x, s, s + c, axis=dim)
        ok &= bool(jnp.array_equal(o, ref))
        s += c
    ok &= (s == x.shape[dim])
    return ok


if __name__ == "__main__":
    key = jax.random.PRNGKey(0)
    # Small NCHW input consistent with typical torch.chunk usage.
    x = jax.random.normal(key, (2, 4, 16, 16), dtype=jnp.float32)

    ok = True

    # TorchChunk(2, 1)(x) == torch.chunk(x, 2, dim=1)  -> 2-D strided DMA path.
    outs = jax.block_until_ready(pallas_chunk(x, 2, dim=1))
    ok &= (len(outs) == 2)
    ok &= _check_against_ref(x, outs, dim=1)

    # Uneven split: torch.chunk(x, 3, dim=1) on a size-4 dim -> two chunks of 2.
    outs_uneven = jax.block_until_ready(pallas_chunk(x, 3, dim=1))
    ok &= (len(outs_uneven) == 2
           and outs_uneven[0].shape == (2, 2, 16, 16)
           and outs_uneven[1].shape == (2, 2, 16, 16))
    ok &= _check_against_ref(x, outs_uneven, dim=1)

    # Leading dim -> contiguous flat DMA fast path.
    outs_d0 = jax.block_until_ready(pallas_chunk(x, 2, dim=0))
    ok &= (len(outs_d0) == 2)
    ok &= _check_against_ref(x, outs_d0, dim=0)

    # Minor axis (tiny strided segments) -> VMEM-staged fallback path.
    outs_dl = jax.block_until_ready(pallas_chunk(x, 2, dim=-1))
    ok &= (len(outs_dl) == 2 and outs_dl[0].shape == (2, 4, 16, 8))
    ok &= _check_against_ref(x, outs_dl, dim=3)

    if ok:
        print("KERNEL_OK")
    else:
        raise SystemExit("mismatch vs reference")
</pallas_src>

<mosaic_0001>
module attributes {stable_mosaic.version = 11 : i64} {
  func.func @_chunk_dma_kernel(%arg0: memref<2x1024xf32, #tpu.memory_space<any>>, %arg1: memref<2x512xf32, #tpu.memory_space<any>>, %arg2: memref<2x512xf32, #tpu.memory_space<any>>, %arg3: memref<2x!tpu.dma_semaphore, #tpu.memory_space<semaphore_mem>>) attributes {dimension_semantics = [], scalar_prefetch = 0 : i64, scratch_operands = 1 : i64, tpu.core_type = #tpu.core_type<tc>} {
    %c0_i32 = arith.constant 0 : i32
    %c0_i32_0 = arith.constant 0 : i32
    %c0_i32_1 = arith.constant 0 : i32
    %0 = tpu.memref_slice %arg0[%c0_i32_0, %c0_i32_1] : memref<2x1024xf32, #tpu.memory_space<any>> -> memref<2x512xf32, #tpu.memory_space<any>>
    %c0_i32_2 = arith.constant 0 : i32
    %c0_i32_3 = arith.constant 0 : i32
    %1 = tpu.memref_slice %arg1[%c0_i32_2, %c0_i32_3] : memref<2x512xf32, #tpu.memory_space<any>> -> memref<2x512xf32, #tpu.memory_space<any>>
    %2 = tpu.memref_slice %arg3[%c0_i32] : memref<2x!tpu.dma_semaphore, #tpu.memory_space<semaphore_mem>> -> memref<1x!tpu.dma_semaphore, #tpu.memory_space<semaphore_mem>>
    %3 = tpu.memref_squeeze %2 : memref<1x!tpu.dma_semaphore, #tpu.memory_space<semaphore_mem>> -> memref<!tpu.dma_semaphore, #tpu.memory_space<semaphore_mem>>
    tpu.enqueue_dma source(%0 : memref<2x512xf32, #tpu.memory_space<any>>) target(%1 : memref<2x512xf32, #tpu.memory_space<any>>) target_semaphore(%3 : memref<!tpu.dma_semaphore, #tpu.memory_space<semaphore_mem>>)
    %c1_i32 = arith.constant 1 : i32
    %c0_i32_4 = arith.constant 0 : i32
    %c512_i32 = arith.constant 512 : i32
    %4 = tpu.memref_slice %arg0[%c0_i32_4, %c512_i32] : memref<2x1024xf32, #tpu.memory_space<any>> -> memref<2x512xf32, #tpu.memory_space<any>>
    %c0_i32_5 = arith.constant 0 : i32
    %c0_i32_6 = arith.constant 0 : i32
    %5 = tpu.memref_slice %arg2[%c0_i32_5, %c0_i32_6] : memref<2x512xf32, #tpu.memory_space<any>> -> memref<2x512xf32, #tpu.memory_space<any>>
    %6 = tpu.memref_slice %arg3[%c1_i32] : memref<2x!tpu.dma_semaphore, #tpu.memory_space<semaphore_mem>> -> memref<1x!tpu.dma_semaphore, #tpu.memory_space<semaphore_mem>>
    %7 = tpu.memref_squeeze %6 : memref<1x!tpu.dma_semaphore, #tpu.memory_space<semaphore_mem>> -> memref<!tpu.dma_semaphore, #tpu.memory_space<semaphore_mem>>
    tpu.enqueue_dma source(%4 : memref<2x512xf32, #tpu.memory_space<any>>) target(%5 : memref<2x512xf32, #tpu.memory_space<any>>) target_semaphore(%7 : memref<!tpu.dma_semaphore, #tpu.memory_space<semaphore_mem>>)
    %c0_i32_7 = arith.constant 0 : i32
    %c0_i32_8 = arith.constant 0 : i32
    %c0_i32_9 = arith.constant 0 : i32
    %8 = tpu.memref_slice %arg0[%c0_i32_8, %c0_i32_9] : memref<2x1024xf32, #tpu.memory_space<any>> -> memref<2x512xf32, #tpu.memory_space<any>>
    %c0_i32_10 = arith.constant 0 : i32
    %c0_i32_11 = arith.constant 0 : i32
    %9 = tpu.memref_slice %arg1[%c0_i32_10, %c0_i32_11] : memref<2x512xf32, #tpu.memory_space<any>> -> memref<2x512xf32, #tpu.memory_space<any>>
    %10 = tpu.memref_slice %arg3[%c0_i32_7] : memref<2x!tpu.dma_semaphore, #tpu.memory_space<semaphore_mem>> -> memref<1x!tpu.dma_semaphore, #tpu.memory_space<semaphore_mem>>
    %11 = tpu.memref_squeeze %10 : memref<1x!tpu.dma_semaphore, #tpu.memory_space<semaphore_mem>> -> memref<!tpu.dma_semaphore, #tpu.memory_space<semaphore_mem>>
    tpu.wait_dma2 semaphore(%11 : memref<!tpu.dma_semaphore, #tpu.memory_space<semaphore_mem>>) src(%8 : memref<2x512xf32, #tpu.memory_space<any>>) dst(%9 : memref<2x512xf32, #tpu.memory_space<any>>)
    %c1_i32_12 = arith.constant 1 : i32
    %c0_i32_13 = arith.constant 0 : i32
    %c512_i32_14 = arith.constant 512 : i32
    %12 = tpu.memref_slice %arg0[%c0_i32_13, %c512_i32_14] : memref<2x1024xf32, #tpu.memory_space<any>> -> memref<2x512xf32, #tpu.memory_space<any>>
    %c0_i32_15 = arith.constant 0 : i32
    %c0_i32_16 = arith.constant 0 : i32
    %13 = tpu.memref_slice %arg2[%c0_i32_15, %c0_i32_16] : memref<2x512xf32, #tpu.memory_space<any>> -> memref<2x512xf32, #tpu.memory_space<any>>
    %14 = tpu.memref_slice %arg3[%c1_i32_12] : memref<2x!tpu.dma_semaphore, #tpu.memory_space<semaphore_mem>> -> memref<1x!tpu.dma_semaphore, #tpu.memory_space<semaphore_mem>>
    %15 = tpu.memref_squeeze %14 : memref<1x!tpu.dma_semaphore, #tpu.memory_space<semaphore_mem>> -> memref<!tpu.dma_semaphore, #tpu.memory_space<semaphore_mem>>
    tpu.wait_dma2 semaphore(%15 : memref<!tpu.dma_semaphore, #tpu.memory_space<semaphore_mem>>) src(%12 : memref<2x512xf32, #tpu.memory_space<any>>) dst(%13 : memref<2x512xf32, #tpu.memory_space<any>>)
    return
  }
}

</mosaic_0001>

<bundles_post_ra>
// kernel: tpu_custom_call.1
= control target key start
LH: loop header
LB: loop body
LE: loop exit
PB: predicated region body
PF: predicated region fallthrough
CT: control target
= control target key end

     0   :  { %s66_s12 = smov [#allocation2]   ;;  %s67_s13 = smov [#allocation3]   ;;  %s98_s0 = inlined_call_operand.hbm [shape: f32[2,1024], index: 0, kind: input, shape index: {}]   ;;  %s99_s1 = inlined_call_operand.hbm [shape: f32[2,512], index: 1, kind: output, shape index: {0}]   ;;  %s100_s2 = inlined_call_operand.hbm [shape: f32[2,512], index: 2, kind: output, shape index: {1}]  }
   0x1   :  { %s21_s11 = scalar_lea.hbm %s98_s0, 128  ;;  %s68_s14 = smov 0  }
   0x2   :  { %20 = dma.general %s98_s0, 128, %s99_s1, %s66_s12, %s67_s13, [#allocation4], %s68_s14, 0  }
   0x3   :  { %s69_s19 = smov [#allocation2 + $0x1]   ;;  %s70_s20 = smov [#allocation5]  }
   0x4   :  { %35 = dma.general %s21_s11, 128, %s100_s2, %s69_s19, %s70_s20, [#allocation6], %s68_s14, 0  }
   0x5   :  { %62 = dma.done.wait [#allocation2], 128 }
   0x6   :  { %63 = vsyncadd [#allocation2], 4294967168 }
   0x7   :  { %64 = dma.done.wait [#allocation2 + $0x1], 128 }
   0x8   :  { %65 = vsyncadd [#allocation2 + $0x1], 4294967168 }
   0x9   :  { %42 = vsyncmov [#allocation2] }
   0xc   :  { %s43_s23 = vpop.sfrf %42 }
   0xd   :  { %p55_p0 = scmp.ne.s32.totalorder %s43_s23, 0 }
   0xf   :  { %47 = shalt.err (%p55_p0)  }
  0x10   :  { %49 = vsyncmov [#allocation2 + $0x1] }
  0x13   :  { %s50_s24 = vpop.sfrf %49 }
  0x14   :  { %p56_p1 = scmp.ne.s32.totalorder %s50_s24, 0 }
  0x16   :  { %54 = shalt.err (%p56_p1)  }

</bundles_post_ra>
